<compile_context>
chip_gen: v5e
topology: v5e:2x2
jax: 0.10.0
libtpu: 0.0.40
codegen_flags: <defaults>
</compile_context>

<pallas_src>
import jax
import jax.numpy as jnp
from jax.experimental import pallas as pl
from jax.experimental.pallas import tpu as pltpu

INPUT_SIZE = 784
HIDDEN = 100
NUM_CLASSES = 10

HID_PAD = 128   # hidden 100 -> 128 lanes
OUT_PAD = 128   # classes 10 -> 128 lanes (lane-dense unmasked stores)
N_STACKED = 5   # hidden_1..hidden_4 + output, all 128x128 after padding


def _round_up(x, m):
    return ((x + m - 1) // m) * m


def _pick_tile_b(b_pad, cap):
    """Largest multiple-of-16 divisor of b_pad that is <= cap (>= 16)."""
    cap = max(16, min(cap - cap % 16, b_pad))
    for cand in range(cap, 15, -16):
        if b_pad % cand == 0:
            return cand
    return 16


def mlp_kernel(x_ref, w0_ref, ws_ref, bs_ref, o_ref):
    """Fused 6-layer MLP on one (TILE_B, 784) batch tile.

    x_ref:  (TILE_B, 784) f32   -- cast to bf16 in-kernel for the MXU
    w0_ref: (784, 128)    bf16  -- input layer weights (cols 100..127 zero)
    ws_ref: (5, 128, 128) bf16  -- hidden_1..hidden_4 + output weights (zero-padded)
    bs_ref: (8, 128)      f32   -- rows 0..5 hold the 6 biases (zero-padded)
    o_ref:  (TILE_B, 128) bf16  -- logits in lanes 0..9, rest zero
    """
    # Layer 0: (TILE_B, 784) @ (784, 128) + b0, ReLU.
    h = jnp.dot(x_ref[...].astype(jnp.bfloat16), w0_ref[...],
                preferred_element_type=jnp.float32)
    h = jnp.maximum(h + bs_ref[0:1, :], 0.0)

    # Layers 1..4: 128x128 hidden layers with ReLU.
    for j in range(4):
        h = jnp.dot(h.astype(jnp.bfloat16), ws_ref[j],
                    preferred_element_type=jnp.float32)
        h = jnp.maximum(h + bs_ref[j + 1:j + 2, :], 0.0)

    # Output layer: no ReLU.
    out = jnp.dot(h.astype(jnp.bfloat16), ws_ref[4],
                  preferred_element_type=jnp.float32)
    out = out + bs_ref[5:6, :]
    o_ref[...] = out.astype(o_ref.dtype)   # lane-dense (TILE_B, 128) bf16 store


def digit_recognition_forward(x, params, *, tile_b_cap=1024):
    """x: (B, 784) f32; params: 6 pairs of (W (in, out), b (out,)) f32.

    Returns (B, NUM_CLASSES) f32 logits matching the PyTorch module's forward
    (up to bf16 matmul/store rounding)."""
    B = x.shape[0]

    # Pad batch only to a multiple of 16 (bf16 (16,128) packing), never to tile_b.
    b_pad = _round_up(B, 16)
    if b_pad != B:
        x = jnp.pad(x, ((0, b_pad - B), (0, 0)))

    tile_b = _pick_tile_b(b_pad, tile_b_cap)
    # v7x megacore: prefer >=2 batch tiles so ("parallel",) feeds both TensorCores,
    # but only if the resulting tiles stay large enough (>=256 rows) to keep the
    # ~0.35us per-step overhead amortized on v5e/v6e.
    if b_pad // tile_b < 2 and b_pad >= 512:
        alt = _pick_tile_b(b_pad, b_pad // 2)
        if alt >= 256:
            tile_b = alt
    grid = (b_pad // tile_b,)

    # ---- pack parameters into 3 grid-invariant, VMEM-resident inputs ----
    (w0, b0), *rest = params
    w0_p = (jnp.zeros((INPUT_SIZE, HID_PAD), jnp.float32)
            .at[:, :HIDDEN].set(w0).astype(jnp.bfloat16))         # (784, 128) bf16
    bs_p = jnp.zeros((8, HID_PAD), jnp.float32).at[0, :HIDDEN].set(b0)
    ws_list = []
    for j, (w, b) in enumerate(rest):
        wp = (jnp.zeros((HID_PAD, HID_PAD), jnp.float32)
              .at[:w.shape[0], :w.shape[1]].set(w))
        ws_list.append(wp)
        bs_p = bs_p.at[j + 1, :b.shape[0]].set(b)
    ws_p = jnp.stack(ws_list).astype(jnp.bfloat16)                 # (5, 128, 128) bf16

    flops = 2 * b_pad * (INPUT_SIZE * HID_PAD
                         + 4 * HID_PAD * HID_PAD
                         + HID_PAD * OUT_PAD)
    bytes_accessed = (b_pad * INPUT_SIZE * 4          # f32 input stream
                      + b_pad * OUT_PAD * 2           # bf16 output stream
                      + w0_p.size * 2 + ws_p.size * 2 + bs_p.size * 4)

    out_p = pl.pallas_call(
        mlp_kernel,
        out_shape=jax.ShapeDtypeStruct((b_pad, OUT_PAD), jnp.bfloat16),
        grid=grid,
        in_specs=[
            # Streaming batch tile; full 784-wide rows (last dim == array dim).
            pl.BlockSpec((tile_b, INPUT_SIZE), lambda i: (i, 0)),
            # Grid-invariant parameters (constant index_maps -> VMEM-resident).
            pl.BlockSpec((INPUT_SIZE, HID_PAD), lambda i: (0, 0)),
            pl.BlockSpec((N_STACKED, HID_PAD, HID_PAD), lambda i: (0, 0, 0)),
            pl.BlockSpec((8, HID_PAD), lambda i: (0, 0)),
        ],
        out_specs=pl.BlockSpec((tile_b, OUT_PAD), lambda i: (i, 0)),
        compiler_params=pltpu.CompilerParams(
            dimension_semantics=("parallel",)),
        cost_estimate=pl.CostEstimate(
            flops=flops, transcendentals=0, bytes_accessed=bytes_accessed),
    )(x, w0_p, ws_p, bs_p)

    # Tiny post-kernel slice/cast on the (b_pad, 128) bf16 block.
    return out_p[:B, :NUM_CLASSES].astype(jnp.float32)


def init_params(key):
    """Deterministic init mimicking nn.Linear's U(-1/sqrt(fan_in), 1/sqrt(fan_in)).
    Weights stored pre-transposed as (in, out) so the kernel computes x @ W + b."""
    dims = [(INPUT_SIZE, HIDDEN), (HIDDEN, HIDDEN), (HIDDEN, HIDDEN),
            (HIDDEN, HIDDEN), (HIDDEN, HIDDEN), (HIDDEN, NUM_CLASSES)]
    params = []
    for fan_in, fan_out in dims:
        key, kw, kb = jax.random.split(key, 3)
        bound = 1.0 / jnp.sqrt(fan_in)
        w = jax.random.uniform(kw, (fan_in, fan_out), jnp.float32, -bound, bound)
        b = jax.random.uniform(kb, (fan_out,), jnp.float32, -bound, bound)
        params.append((w, b))
    return params


def reference_forward(x, params):
    h = x
    for i, (w, b) in enumerate(params):
        h = h @ w + b
        if i < len(params) - 1:
            h = jnp.maximum(h, 0.0)
    return h


if __name__ == "__main__":
    key = jax.random.PRNGKey(0)
    key, kx = jax.random.split(key)
    params = init_params(key)

    # Small canonical check (single batch tile).
    batch = 8
    x = jax.random.normal(kx, (batch, INPUT_SIZE), jnp.float32)
    out = jax.block_until_ready(digit_recognition_forward(x, params))
    ref = reference_forward(x, params)
    assert out.shape == (batch, NUM_CLASSES)
    # bf16 matmul inputs / bf16 output store with f32 accumulation -> loose tol.
    assert jnp.allclose(out, ref, atol=5e-2, rtol=5e-2), "mismatch vs reference (batch=8)"

    # Second check exercising batch padding (40 -> 48) and a multi-tile grid.
    key, kx2 = jax.random.split(key)
    batch2 = 40
    x2 = jax.random.normal(kx2, (batch2, INPUT_SIZE), jnp.float32)
    out2 = jax.block_until_ready(
        digit_recognition_forward(x2, params, tile_b_cap=16))   # grid of 3 tiles
    ref2 = reference_forward(x2, params)
    assert out2.shape == (batch2, NUM_CLASSES)
    assert jnp.allclose(out2, ref2, atol=5e-2, rtol=5e-2), "mismatch vs reference (batch=40)"

    print("KERNEL_OK")
</pallas_src>

<mosaic_0001>
module attributes {stable_mosaic.version = 11 : i64} {
  func.func @mlp_kernel(%arg0: i32, %arg1: memref<16x784xf32, #tpu.memory_space<vmem>>, %arg2: memref<784x128xbf16, #tpu.memory_space<vmem>>, %arg3: memref<5x128x128xbf16, #tpu.memory_space<vmem>>, %arg4: memref<8x128xf32, #tpu.memory_space<vmem>>, %arg5: memref<16x128xbf16, #tpu.memory_space<vmem>>) attributes {dimension_semantics = [#tpu.dimension_semantics<parallel>], iteration_bounds = array<i64: 1>, scalar_prefetch = 0 : i64, scratch_operands = 0 : i64, tpu.core_type = #tpu.core_type<tc>, window_params = [{transform_indices = @transform_0, window_bounds = array<i64: 16, 784>}, {pipeline_mode = #tpu.pipeline_mode<synchronous>, transform_indices = @transform_1, window_bounds = array<i64: 784, 128>}, {pipeline_mode = #tpu.pipeline_mode<synchronous>, transform_indices = @transform_2, window_bounds = array<i64: 5, 128, 128>}, {pipeline_mode = #tpu.pipeline_mode<synchronous>, transform_indices = @transform_3, window_bounds = array<i64: 8, 128>}, {transform_indices = @transform_4, window_bounds = array<i64: 16, 128>}]} {
    %c0 = arith.constant 0 : index
    %c0_0 = arith.constant 0 : index
    %0 = vector.load %arg1[%c0, %c0_0] : memref<16x784xf32, #tpu.memory_space<vmem>>, vector<16x784xf32>
    %1 = arith.truncf %0 : vector<16x784xf32> to vector<16x784xbf16>
    %c0_1 = arith.constant 0 : index
    %c0_2 = arith.constant 0 : index
    %2 = vector.load %arg2[%c0_1, %c0_2] : memref<784x128xbf16, #tpu.memory_space<vmem>>, vector<784x128xbf16>
    %cst = arith.constant dense<0.000000e+00> : vector<16x128xf32>
    %3 = tpu.matmul %1, %2, %cst {dimension_numbers = #tpu.dot_dimension_numbers<[1], [0], [0], [1], [0, 0, 1, 1], [], []>} : vector<16x784xbf16>, vector<784x128xbf16>, vector<16x128xf32> -> vector<16x128xf32>
    %c0_3 = arith.constant 0 : index
    %c0_4 = arith.constant 0 : index
    %4 = vector.load %arg4[%c0_3, %c0_4] : memref<8x128xf32, #tpu.memory_space<vmem>>, vector<1x128xf32>
    %5 = vector.broadcast %4 : vector<1x128xf32> to vector<16x128xf32>
    %6 = arith.addf %3, %5 : vector<16x128xf32>
    %cst_5 = arith.constant 0.000000e+00 : f32
    %7 = vector.broadcast %cst_5 : f32 to vector<16x128xf32>
    %8 = arith.maximumf %6, %7 : vector<16x128xf32>
    %9 = arith.truncf %8 : vector<16x128xf32> to vector<16x128xbf16>
    %c0_6 = arith.constant 0 : index
    %c0_7 = arith.constant 0 : index
    %c0_8 = arith.constant 0 : index
    %10 = vector.load %arg3[%c0_6, %c0_7, %c0_8] : memref<5x128x128xbf16, #tpu.memory_space<vmem>>, vector<1x128x128xbf16>
    %11 = vector.shape_cast %10 : vector<1x128x128xbf16> to vector<128x128xbf16>
    %cst_9 = arith.constant dense<0.000000e+00> : vector<16x128xf32>
    %12 = tpu.matmul %9, %11, %cst_9 {dimension_numbers = #tpu.dot_dimension_numbers<[1], [0], [0], [1], [0, 0, 1, 1], [], []>} : vector<16x128xbf16>, vector<128x128xbf16>, vector<16x128xf32> -> vector<16x128xf32>
    %c1 = arith.constant 1 : index
    %c0_10 = arith.constant 0 : index
    %13 = vector.load %arg4[%c1, %c0_10] : memref<8x128xf32, #tpu.memory_space<vmem>>, vector<1x128xf32>
    %14 = vector.broadcast %13 : vector<1x128xf32> to vector<16x128xf32>
    %15 = arith.addf %12, %14 : vector<16x128xf32>
    %cst_11 = arith.constant 0.000000e+00 : f32
    %16 = vector.broadcast %cst_11 : f32 to vector<16x128xf32>
    %17 = arith.maximumf %15, %16 : vector<16x128xf32>
    %18 = arith.truncf %17 : vector<16x128xf32> to vector<16x128xbf16>
    %c1_12 = arith.constant 1 : index
    %c0_13 = arith.constant 0 : index
    %c0_14 = arith.constant 0 : index
    %19 = vector.load %arg3[%c1_12, %c0_13, %c0_14] : memref<5x128x128xbf16, #tpu.memory_space<vmem>>, vector<1x128x128xbf16>
    %20 = vector.shape_cast %19 : vector<1x128x128xbf16> to vector<128x128xbf16>
    %cst_15 = arith.constant dense<0.000000e+00> : vector<16x128xf32>
    %21 = tpu.matmul %18, %20, %cst_15 {dimension_numbers = #tpu.dot_dimension_numbers<[1], [0], [0], [1], [0, 0, 1, 1], [], []>} : vector<16x128xbf16>, vector<128x128xbf16>, vector<16x128xf32> -> vector<16x128xf32>
    %c2 = arith.constant 2 : index
    %c0_16 = arith.constant 0 : index
    %22 = vector.load %arg4[%c2, %c0_16] : memref<8x128xf32, #tpu.memory_space<vmem>>, vector<1x128xf32>
    %23 = vector.broadcast %22 : vector<1x128xf32> to vector<16x128xf32>
    %24 = arith.addf %21, %23 : vector<16x128xf32>
    %cst_17 = arith.constant 0.000000e+00 : f32
    %25 = vector.broadcast %cst_17 : f32 to vector<16x128xf32>
    %26 = arith.maximumf %24, %25 : vector<16x128xf32>
    %27 = arith.truncf %26 : vector<16x128xf32> to vector<16x128xbf16>
    %c2_18 = arith.constant 2 : index
    %c0_19 = arith.constant 0 : index
    %c0_20 = arith.constant 0 : index
    %28 = vector.load %arg3[%c2_18, %c0_19, %c0_20] : memref<5x128x128xbf16, #tpu.memory_space<vmem>>, vector<1x128x128xbf16>
    %29 = vector.shape_cast %28 : vector<1x128x128xbf16> to vector<128x128xbf16>
    %cst_21 = arith.constant dense<0.000000e+00> : vector<16x128xf32>
    %30 = tpu.matmul %27, %29, %cst_21 {dimension_numbers = #tpu.dot_dimension_numbers<[1], [0], [0], [1], [0, 0, 1, 1], [], []>} : vector<16x128xbf16>, vector<128x128xbf16>, vector<16x128xf32> -> vector<16x128xf32>
    %c3 = arith.constant 3 : index
    %c0_22 = arith.constant 0 : index
    %31 = vector.load %arg4[%c3, %c0_22] : memref<8x128xf32, #tpu.memory_space<vmem>>, vector<1x128xf32>
    %32 = vector.broadcast %31 : vector<1x128xf32> to vector<16x128xf32>
    %33 = arith.addf %30, %32 : vector<16x128xf32>
    %cst_23 = arith.constant 0.000000e+00 : f32
    %34 = vector.broadcast %cst_23 : f32 to vector<16x128xf32>
    %35 = arith.maximumf %33, %34 : vector<16x128xf32>
    %36 = arith.truncf %35 : vector<16x128xf32> to vector<16x128xbf16>
    %c3_24 = arith.constant 3 : index
    %c0_25 = arith.constant 0 : index
    %c0_26 = arith.constant 0 : index
    %37 = vector.load %arg3[%c3_24, %c0_25, %c0_26] : memref<5x128x128xbf16, #tpu.memory_space<vmem>>, vector<1x128x128xbf16>
    %38 = vector.shape_cast %37 : vector<1x128x128xbf16> to vector<128x128xbf16>
    %cst_27 = arith.constant dense<0.000000e+00> : vector<16x128xf32>
    %39 = tpu.matmul %36, %38, %cst_27 {dimension_numbers = #tpu.dot_dimension_numbers<[1], [0], [0], [1], [0, 0, 1, 1], [], []>} : vector<16x128xbf16>, vector<128x128xbf16>, vector<16x128xf32> -> vector<16x128xf32>
    %c4 = arith.constant 4 : index
    %c0_28 = arith.constant 0 : index
    %40 = vector.load %arg4[%c4, %c0_28] : memref<8x128xf32, #tpu.memory_space<vmem>>, vector<1x128xf32>
    %41 = vector.broadcast %40 : vector<1x128xf32> to vector<16x128xf32>
    %42 = arith.addf %39, %41 : vector<16x128xf32>
    %cst_29 = arith.constant 0.000000e+00 : f32
    %43 = vector.broadcast %cst_29 : f32 to vector<16x128xf32>
    %44 = arith.maximumf %42, %43 : vector<16x128xf32>
    %45 = arith.truncf %44 : vector<16x128xf32> to vector<16x128xbf16>
    %c4_30 = arith.constant 4 : index
    %c0_31 = arith.constant 0 : index
    %c0_32 = arith.constant 0 : index
    %46 = vector.load %arg3[%c4_30, %c0_31, %c0_32] : memref<5x128x128xbf16, #tpu.memory_space<vmem>>, vector<1x128x128xbf16>
    %47 = vector.shape_cast %46 : vector<1x128x128xbf16> to vector<128x128xbf16>
    %cst_33 = arith.constant dense<0.000000e+00> : vector<16x128xf32>
    %48 = tpu.matmul %45, %47, %cst_33 {dimension_numbers = #tpu.dot_dimension_numbers<[1], [0], [0], [1], [0, 0, 1, 1], [], []>} : vector<16x128xbf16>, vector<128x128xbf16>, vector<16x128xf32> -> vector<16x128xf32>
    %c5 = arith.constant 5 : index
    %c0_34 = arith.constant 0 : index
    %49 = vector.load %arg4[%c5, %c0_34] : memref<8x128xf32, #tpu.memory_space<vmem>>, vector<1x128xf32>
    %50 = vector.broadcast %49 : vector<1x128xf32> to vector<16x128xf32>
    %51 = arith.addf %48, %50 : vector<16x128xf32>
    %52 = arith.truncf %51 : vector<16x128xf32> to vector<16x128xbf16>
    %c0_35 = arith.constant 0 : index
    %c0_36 = arith.constant 0 : index
    %53 = vector.load %arg5[%c0_35, %c0_36] : memref<16x128xbf16, #tpu.memory_space<vmem>>, vector<16x128xbf16>
    tpu.vector_store %arg5[%c0_35, %c0_36], %52 {strides = array<i32>} : memref<16x128xbf16, #tpu.memory_space<vmem>>, vector<16x128xbf16>,
    return
  }
  func.func @transform_0(%arg0: i32) -> (i32, i32) {
    %c0_i32 = arith.constant 0 : i32
    %c0_i32_0 = arith.constant 0 : i32
    return %arg0, %c0_i32 : i32, i32
  }
  func.func @transform_1(%arg0: i32) -> (i32, i32) {
    %c0_i32 = arith.constant 0 : i32
    %c0_i32_0 = arith.constant 0 : i32
    %c0_i32_1 = arith.constant 0 : i32
    return %c0_i32, %c0_i32_0 : i32, i32
  }
  func.func @transform_2(%arg0: i32) -> (i32, i32, i32) {
    %c0_i32 = arith.constant 0 : i32
    %c0_i32_0 = arith.constant 0 : i32
    %c0_i32_1 = arith.constant 0 : i32
    %c0_i32_2 = arith.constant 0 : i32
    return %c0_i32, %c0_i32_0, %c0_i32_1 : i32, i32, i32
  }
  func.func @transform_3(%arg0: i32) -> (i32, i32) {
    %c0_i32 = arith.constant 0 : i32
    %c0_i32_0 = arith.constant 0 : i32
    %c0_i32_1 = arith.constant 0 : i32
    return %c0_i32, %c0_i32_0 : i32, i32
  }
  func.func @transform_4(%arg0: i32) -> (i32, i32) {
    %c0_i32 = arith.constant 0 : i32
    %c0_i32_0 = arith.constant 0 : i32
    return %arg0, %c0_i32 : i32, i32
  }
}

</mosaic_0001>

<bundles_post_ra>
// kernel: tpu_custom_call.1
= control target key start
LH: loop header
LB: loop body
LE: loop exit
PB: predicated region body
PF: predicated region fallthrough
CT: control target
= control target key end

     0   :  { %9 = vsyncpa [#allocation3], 0  ;;  %s1693_s0 = inlined_call_operand.hbm [shape: f32[16,784], index: 0, kind: input, shape index: {}]   ;;  %s1694_s1 = inlined_call_operand.hbm [shape: bf16[784,128], index: 1, kind: input, shape index: {}]   ;;  %s1695_s2 = inlined_call_operand.hbm [shape: bf16[5,128,128], index: 2, kind: input, shape index: {}]   ;;  %s1696_s3 = inlined_call_operand.hbm [shape: f32[8,128], index: 3, kind: input, shape index: {}]   ;;  %s1697_s4 = inlined_call_operand.hbm [shape: bf16[16,128], index: 4, kind: output, shape index: {}]  }
   0x1   :  { %10 = vsyncpa [#allocation6], 0 }
   0x2   :  { %11 = vsyncpa [#allocation9], 0  ;;  %s30_s17 = sshll.u32 %s1694_s1, 4  ;;  %s31_s17 = int_to_ptr.hbm [resolvable:$true] %s30_s17 }
   0x3   :  { %12 = vsyncpa [#allocation4], 0  ;;  %s1635_s18 = smov [#allocation5]   ;;  %s17_s22 = sshll.u32 %s1693_s0, 4  ;;  %s18_s22 = int_to_ptr.hbm [resolvable:$true] %s17_s22 }
   0x4   :  { %s32_s19 = sshll.u32 %s1635_s18, 4  ;;  %s1636_s23 = smov 64   ;;  %s33_s19 = int_to_ptr.vmem [resolvable:$true] %s32_s19 }
   0x5   :  { %s1637_s24 = smov 4   ;;  %s1638_s25 = smov [#allocation2]  }
   0x6   :  { %38 = dma.hbm_to_vmem [thread:$0]  %s31_s17, 6272, %s33_s19, [#allocation6], %s1636_s23, %s1636_s23, %s1637_s24  }
   0x7   :  { %s19_s26 = sshll.u32 %s1638_s25, 4  ;;  %s1639_s1 = smov 896   ;;  %s20_s26 = int_to_ptr.vmem [resolvable:$true] %s19_s26 }
   0x8   :  { %s1640_s27 = smov 56   ;;  %s43_s30 = sshll.u32 %s1695_s2, 4  ;;  %s44_s30 = int_to_ptr.hbm [resolvable:$true] %s43_s30 }
   0x9   :  { %25 = dma.hbm_to_vmem [thread:$0]  %s18_s22, 1792, %s20_s26, [#allocation3], %s1639_s1, %s1639_s1, %s1640_s27  }
   0xa   :  { %s1641_s5 = smov [#allocation7]   ;;  %s57_s8 = sshll.u32 %s1696_s3, 4  ;;  %s58_s8 = int_to_ptr.hbm [resolvable:$true] %s57_s8 }
   0xb   :  { %s45_s0 = sshll.u32 %s1641_s5, 4  ;;  %s1642_s9 = smov [#allocation8]   ;;  %s46_s0 = int_to_ptr.vmem [resolvable:$true] %s45_s0 }
   0xc   :  { %51 = dma.hbm_to_vmem [thread:$0]  %s44_s30, 5120, %s46_s0, [#allocation6], %s1636_s23, %s1636_s23, %s1637_s24  }
   0xd   :  { %s59_s10 = sshll.u32 %s1642_s9, 4  ;;  %s60_s10 = int_to_ptr.vmem [resolvable:$true] %s59_s10 }
   0xe   :  { %62 = dma.hbm_to_vmem [thread:$0]  %s58_s8, 128, %s60_s10, [#allocation9]  }
   0xf   :  { %1627 = dma.done.wait [#allocation3], 1792  }
  0x10   :  { %1628 = vsyncadd [#allocation3], 4294965504 }
  0x11   :  { %1629 = dma.done.wait [#allocation6], 11392  }
  0x12   :  { %1630 = vsyncadd [#allocation6], 4294955904 }
  0x13   :  { %1631 = dma.done.wait [#allocation9], 128  }
  0x14   :  { %1632 = vsyncadd [#allocation9], 4294967168  ;;  %v1405_v0 = vld [vmem:[#allocation5 + $0x38] sm:$0xff]  ;;  %v1404_v4 = vld [vmem:[#allocation5 + $0x30] sm:$0xff]  ;;  %vm495_vm0 = vcmask 130048   ;;  %s1643_s2 = smov [#allocation10]  }
  0x15   :  { %v1413_v1 = vld [vmem:[#allocation5 + $0x78] sm:$0xff]  ;;  %499 = vmatpush.bf16.msra.mxu0 %v1405_v0  ;;  %v1412_v5 = vld [vmem:[#allocation5 + $0x70] sm:$0xff]  ;;  %v1403_v8 = vld [vmem:[#allocation5 + $0x28] sm:$0xff]  ;;  %s1024_s3 = sshll.u32 %s1643_s2, 4  ;;  %s1026_s13 = sshll.u32 %s1697_s4, 4  ;;  %s1025_s3 = int_to_ptr.vmem [resolvable:$true] %s1024_s3  ;;  %s1027_s13 = int_to_ptr.hbm [resolvable:$true] %s1026_s13 }
  0x16   :  { %v1421_v2 = vld [vmem:[#allocation5 + $0xb8] sm:$0xff]  ;;  %513 = vmatpush.bf16.msra.mxu1 %v1413_v1  ;;  %v1420_v6 = vld [vmem:[#allocation5 + $0xb0] sm:$0xff]  ;;  %v1411_v9 = vld [vmem:[#allocation5 + $0x68] sm:$0xff] }
  0x17   :  { %v1429_v3 = vld [vmem:[#allocation5 + $0xf8] sm:$0xff]  ;;  %527 = vmatpush.bf16.msra.mxu2 %v1421_v2  ;;  %v1428_v7 = vld [vmem:[#allocation5 + $0xf0] sm:$0xff]  ;;  %v1419_v10 = vld [vmem:[#allocation5 + $0xa8] sm:$0xff] }
  0x18   :  { %541 = vmatpush.bf16.msra.mxu3 %v1429_v3  ;;  %v1427_v11 = vld [vmem:[#allocation5 + $0xe8] sm:$0xff]  ;;  %v1402_v12 = vld [vmem:[#allocation5 + $0x20] sm:$0xff]  ;;  %v1401_v16 = vld [vmem:[#allocation5 + $0x18] sm:$0xff] }
  0x19   :  { %500 = vmatpush.bf16.msra.mxu0 %v1404_v4  ;;  %v1410_v13 = vld [vmem:[#allocation5 + $0x60] sm:$0xff]  ;;  %v1409_v17 = vld [vmem:[#allocation5 + $0x58] sm:$0xff]  ;;  %v1400_v20 = vld [vmem:[#allocation5 + $0x10] sm:$0xff] }
  0x1a   :  { %514 = vmatpush.bf16.msra.mxu1 %v1412_v5  ;;  %v1418_v14 = vld [vmem:[#allocation5 + $0xa0] sm:$0xff]  ;;  %v1417_v18 = vld [vmem:[#allocation5 + $0x98] sm:$0xff]  ;;  %v1408_v21 = vld [vmem:[#allocation5 + $0x50] sm:$0xff] }
  0x1b   :  { %528 = vmatpush.bf16.msra.mxu2 %v1420_v6  ;;  %v1426_v15 = vld [vmem:[#allocation5 + $0xe0] sm:$0xff]  ;;  %v1425_v19 = vld [vmem:[#allocation5 + $0xd8] sm:$0xff]  ;;  %v1416_v22 = vld [vmem:[#allocation5 + $0x90] sm:$0xff] }
  0x1c   :  { %542 = vmatpush.bf16.msra.mxu3 %v1428_v7  ;;  %v1424_v23 = vld [vmem:[#allocation5 + $0xd0] sm:$0xff]  ;;  %v1399_v24 = vld [vmem:[#allocation5 + $0x8] sm:$0xff]  ;;  %v1398_v28 = vld [vmem:[#allocation5] sm:$0xff] }
  0x1d   :  { %501 = vmatpush.bf16.msra.mxu0 %v1403_v8  ;;  %v1407_v25 = vld [vmem:[#allocation5 + $0x48] sm:$0xff]  ;;  %v1406_v29 = vld [vmem:[#allocation5 + $0x40] sm:$0xff]  ;;  %v80_v30 = vld [vmem:[#allocation2] sm:$0xff] }
  0x1e   :  { %515 = vmatpush.bf16.msra.mxu1 %v1411_v9  ;;  %v1415_v26 = vld [vmem:[#allocation5 + $0x88] sm:$0xff]  ;;  %v81_v32 = vld [vmem:[#allocation2 + $0x8] sm:$0xff]  ;;  %v88_v33 = vld [vmem:[#allocation2 + $0x40] sm:$0xff] }
  0x1f   :  { %529 = vmatpush.bf16.msra.mxu2 %v1419_v10  ;;  %v1423_v27 = vld [vmem:[#allocation5 + $0xc8] sm:$0xff]  ;;  %v1437_v34 = vld [vmem:[#allocation5 + $0x138] sm:$0xff]  ;;  %v1414_v36 = vld [vmem:[#allocation5 + $0x80] sm:$0xff]  ;;  %v95_v43 = vpack.c.bf16 %v88_v33, %v81_v32 }
  0x20   :  { %543 = vmatpush.bf16.msra.mxu3 %v1427_v11  ;;  %v87_v31 = vld [vmem:[#allocation2 + $0x38] sm:$0xff]  ;;  %v1445_v35 = vld [vmem:[#allocation5 + $0x178] sm:$0xff]  ;;  %v1422_v37 = vld [vmem:[#allocation5 + $0xc0] sm:$0xff] }
  0x21   :  { %502 = vmatpush.bf16.msra.mxu0 %v1402_v12  ;;  %v82_v38 = vld [vmem:[#allocation2 + $0x10] sm:$0xff]  ;;  %v89_v39 = vld [vmem:[#allocation2 + $0x48] sm:$0xff]  ;;  %v94_v40 = vpack.c.bf16 %v87_v31, %v80_v30  ;;  %v83_v41 = vld [vmem:[#allocation2 + $0x18] sm:$0xff] }
  0x22   :  { %516 = vmatpush.bf16.msra.mxu1 %v1410_v13  ;;  %v90_v42 = vld [vmem:[#allocation2 + $0x50] sm:$0xff]  ;;  %v1436_v45 = vld [vmem:[#allocation5 + $0x130] sm:$0xff]  ;;  %v96_v47 = vpack.c.bf16 %v89_v39, %v82_v38  ;;  %v1435_v49 = vld [vmem:[#allocation5 + $0x128] sm:$0xff] }
  0x23   :  { %530 = vmatpush.bf16.msra.mxu2 %v1418_v14  ;;  %v1446_v44 = vld [vmem:[#allocation5 + $0x180] sm:$0xff]  ;;  %v1444_v46 = vld [vmem:[#allocation5 + $0x170] sm:$0xff]  ;;  %v97_v48 = vpack.c.bf16 %v90_v42, %v83_v41  ;;  %v1443_v50 = vld [vmem:[#allocation5 + $0x168] sm:$0xff] }
  0x24   :  { %544 = vmatpush.bf16.msra.mxu3 %v1426_v15  ;;  %v1434_v51 = vld [vmem:[#allocation5 + $0x120] sm:$0xff]  ;;  %v1433_v53 = vld [vmem:[#allocation5 + $0x118] sm:$0xff]  ;;  %v1432_v57 = vld [vmem:[#allocation5 + $0x110] sm:$0xff] }
  0x25   :  { %503 = vmatpush.bf16.msra.mxu0 %v1401_v16  ;;  %v1442_v52 = vld [vmem:[#allocation5 + $0x160] sm:$0xff]  ;;  %v1441_v54 = vld [vmem:[#allocation5 + $0x158] sm:$0xff]  ;;  %v1440_v58 = vld [vmem:[#allocation5 + $0x150] sm:$0xff] }
  0x26   :  { %517 = vmatpush.bf16.msra.mxu1 %v1409_v17  ;;  %v86_v55 = vld [vmem:[#allocation2 + $0x30] sm:$0xff]  ;;  %v93_v56 = vld [vmem:[#allocation2 + $0x68] sm:$0xff]  ;;  %v1431_v60 = vld [vmem:[#allocation5 + $0x108] sm:$0xff] }
  0x27   :  { %531 = vmatpush.bf16.msra.mxu2 %v1417_v18  ;;  %v100_v59 = vpack.c.bf16 %v93_v56, %v86_v55  ;;  %v1439_v61 = vld [vmem:[#allocation5 + $0x148] sm:$0xff]  ;;  %v1430_v62 = vld [vmem:[#allocation5 + $0x100] sm:$0xff]  ;;  %v84_v0 = vld [vmem:[#allocation2 + $0x20] sm:$0xff] }
  0x28   :  { %545 = vmatpush.bf16.msra.mxu3 %v1425_v19  ;;  %v1438_v63 = vld [vmem:[#allocation5 + $0x140] sm:$0xff]  ;;  %v91_v1 = vld [vmem:[#allocation2 + $0x58] sm:$0xff]  ;;  %v85_v2 = vld [vmem:[#allocation2 + $0x28] sm:$0xff] }
  0x29   :  { %504 = vmatpush.bf16.msra.mxu0 %v1400_v20  ;;  %v92_v3 = vld [vmem:[#allocation2 + $0x60] sm:$0xff]  ;;  %v98_v4 = vpack.c.bf16 %v91_v1, %v84_v0  ;;  %v1454_v6 = vld [vmem:[#allocation7 + $0x38] sm:$0xff]  ;;  %v1453_v7 = vld [vmem:[#allocation7 + $0x30] sm:$0xff] }
  0x2a   :  { %518 = vmatpush.bf16.msra.mxu1 %v1408_v21  ;;  %v99_v5 = vpack.c.bf16 %v92_v3, %v85_v2  ;;  %v1452_v8 = vld [vmem:[#allocation7 + $0x28] sm:$0xff]  ;;  %v1451_v9 = vld [vmem:[#allocation7 + $0x20] sm:$0xff]  ;;  %v1450_v10 = vld [vmem:[#allocation7 + $0x18] sm:$0xff] }
  0x2b   :  { %532 = vmatpush.bf16.msra.mxu2 %v1416_v22  ;;  %v1449_v11 = vld [vmem:[#allocation7 + $0x10] sm:$0xff]  ;;  %v1448_v12 = vld [vmem:[#allocation7 + $0x8] sm:$0xff]  ;;  %v1447_v16 = vld [vmem:[#allocation7] sm:$0xff] }
  0x2c   :  { %546 = vmatpush.bf16.msra.mxu3 %v1424_v23  ;;  %v1501_v17 = vld [vmem:[#allocation8] ss:$0 sm:$0xff]  ;;  %v1462_v18 = vld [vmem:[#allocation7 + $0x78] sm:$0xff]  ;;  %v1461_v20 = vld [vmem:[#allocation7 + $0x70] sm:$0xff] }
  0x2d   :  { %505 = vmatpush.bf16.msra.mxu0 %v1399_v24  ;;  %v1469_v55 = vld [vmem:[#allocation7 + $0xb0] sm:$0xff]  ;;  %v1468_v56 = vld [vmem:[#allocation7 + $0xa8] sm:$0xff]  ;;  %v1466_v2 = vld [vmem:[#allocation7 + $0x98] sm:$0xff] }
  0x2e   :  { %519 = vmatpush.bf16.msra.mxu1 %v1407_v25  ;;  %v1460_v25 = vld [vmem:[#allocation7 + $0x68] sm:$0xff]  ;;  %v1465_v3 = vld [vmem:[#allocation7 + $0x90] sm:$0xff] }
  0x2f   :  { %533 = vmatpush.bf16.msra.mxu2 %v1415_v26 }
  0x30   :  { %547 = vmatpush.bf16.msra.mxu3 %v1423_v27 }
  0x31   :  { %506 = vmatpush.bf16.msra.mxu0 %v1398_v28 }
  0x32   :  { %520 = vmatpush.bf16.msra.mxu1 %v1406_v29  ;;  %v1459_v29 = vld [vmem:[#allocation7 + $0x60] sm:$0xff] }
  0x33   :  { %534 = vmatpush.bf16.msra.mxu2 %v1414_v36 }
  0x34   :  { %548 = vmatpush.bf16.msra.mxu3 %v1422_v37  ;;  %507 = vmatmul.bf16.vlgmr.msra.gmra.mxu0 %v94_v40 }
  0x35   :  { %555 = vmatpush.bf16.msrb.mxu0 %v1437_v34  ;;  %521 = vmatmul.bf16.vlgmr.msra.gmra.mxu1 %v95_v43 }
  0x36   :  { %569 = vmatpush.bf16.msrb.mxu1 %v1445_v35  ;;  %535 = vmatmul.bf16.vlgmr.msra.gmra.mxu2 %v96_v47 }
  0x37   :  { %590 = vmatpush.bf16.msrb.mxu2 %v1446_v44  ;;  %549 = vmatmul.bf16.vlgmr.msra.gmra.mxu3 %v97_v48 }
  0x38   :  { %666 = vmatpush.bf16.msrb.mxu3 %v1454_v6  ;;  %v1478_v6 = vld [vmem:[#allocation7 + $0xf8] sm:$0xff] }
  0x39   :  { %556 = vmatpush.bf16.msrb.mxu0 %v1436_v45 }
  0x3a   :  { %570 = vmatpush.bf16.msrb.mxu1 %v1444_v46 }
  0x3b   :  { %750 = vmatpush.bf16.msra.mxu2 %v1462_v18  ;;  %v1474_v18 = vld [vmem:[#allocation7 + $0xd8] sm:$0xff] }
  0x3c   :  { %667 = vmatpush.bf16.msrb.mxu3 %v1453_v7  ;;  %v1477_v7 = vld [vmem:[#allocation7 + $0xf0] sm:$0xff] }
  0x3d   :  { %557 = vmatpush.bf16.msrb.mxu0 %v1435_v49 }
  0x3e   :  { %571 = vmatpush.bf16.msrb.mxu1 %v1443_v50  ;;  %v1458_v50 = vld [vmem:[#allocation7 + $0x58] sm:$0xff] }
  0x3f   :  { %751 = vmatpush.bf16.msra.mxu2 %v1461_v20  ;;  %v1472_v20 = vld [vmem:[#allocation7 + $0xc8] sm:$0xff] }
  0x40   :  { %668 = vmatpush.bf16.msrb.mxu3 %v1452_v8  ;;  %v1476_v8 = vld [vmem:[#allocation7 + $0xe8] sm:$0xff] }
  0x41   :  { %558 = vmatpush.bf16.msrb.mxu0 %v1434_v51  ;;  %v1457_v51 = vld [vmem:[#allocation7 + $0x50] sm:$0xff] }
  0x42   :  { %572 = vmatpush.bf16.msrb.mxu1 %v1442_v52  ;;  %v1456_v52 = vld [vmem:[#allocation7 + $0x48] sm:$0xff] }
  0x43   :  { %752 = vmatpush.bf16.msra.mxu2 %v1460_v25  ;;  %v1483_v25 = vld [vmem:[#allocation7 + $0x120] sm:$0xff] }
  0x44   :  { %669 = vmatpush.bf16.msrb.mxu3 %v1451_v9  ;;  %v1475_v9 = vld [vmem:[#allocation7 + $0xe0] sm:$0xff] }
  0x45   :  { %559 = vmatpush.bf16.msrb.mxu0 %v1433_v53  ;;  %v1455_v53 = vld [vmem:[#allocation7 + $0x40] sm:$0xff] }
  0x46   :  { %573 = vmatpush.bf16.msrb.mxu1 %v1441_v54  ;;  %1237 = vmatmul.msk.bf16.vlgmr.msrb.gmra.mxu2 %vm495_vm0, %v100_v59  ;;  %v1470_v54 = vld [vmem:[#allocation7 + $0xb8] sm:$0xff]  ;;  %v1502_v59 = vld [vmem:[#allocation8 + $0x1] ss:$0 sm:$0xff] }
  0x47   :  { %753 = vmatpush.bf16.msra.mxu2 %v1459_v29 }
  0x48   :  { %670 = vmatpush.bf16.msrb.mxu3 %v1450_v10 }
  0x49   :  { %560 = vmatpush.bf16.msrb.mxu0 %v1432_v57  ;;  %v1467_v57 = vld [vmem:[#allocation7 + $0xa0] sm:$0xff] }
  0x4a   :  { %574 = vmatpush.bf16.msrb.mxu1 %v1440_v58 }
  0x4b   :  { %754 = vmatpush.bf16.msra.mxu2 %v1458_v50 }
  0x4c   :  { %671 = vmatpush.bf16.msrb.mxu3 %v1449_v11  ;;  %v1503_v11 = vld [vmem:[#allocation8 + $0x2] ss:$0 sm:$0xff] }
  0x4d   :  { %561 = vmatpush.bf16.msrb.mxu0 %v1431_v60 }
  0x4e   :  { %575 = vmatpush.bf16.msrb.mxu1 %v1439_v61 }
  0x4f   :  { %755 = vmatpush.bf16.msra.mxu2 %v1457_v51 }
  0x50   :  { %672 = vmatpush.bf16.msrb.mxu3 %v1448_v12 }
  0x51   :  { %562 = vmatpush.bf16.msrb.mxu0 %v1430_v62 }
  0x52   :  { %576 = vmatpush.bf16.msrb.mxu1 %v1438_v63 }
  0x53   :  { %756 = vmatpush.bf16.msra.mxu2 %v1456_v52 }
  0x54   :  { %563 = vmatmul.bf16.vlgmr.msrb.gmra.mxu0 %v98_v4  ;;  %673 = vmatpush.bf16.msrb.mxu3 %v1447_v16  ;;  %v1464_v4 = vld [vmem:[#allocation7 + $0x88] sm:$0xff] }
  0x55   :  { %577 = vmatmul.bf16.vlgmr.msrb.gmra.mxu1 %v99_v5  ;;  %834 = vmatpush.bf16.msra.mxu0 %v1470_v54  ;;  %v1463_v5 = vld [vmem:[#allocation7 + $0x80] sm:$0xff] }
  0x56   :  { %918 = vmatpush.bf16.msra.mxu1 %v1478_v6 }
  0x57   :  { %757 = vmatpush.bf16.msra.mxu2 %v1455_v53 }
  0x59   :  { %835 = vmatpush.bf16.msra.mxu0 %v1469_v55 }
  0x5a   :  { %919 = vmatpush.bf16.msra.mxu1 %v1477_v7 }
  0x5d   :  { %836 = vmatpush.bf16.msra.mxu0 %v1468_v56 }
  0x5e   :  { %920 = vmatpush.bf16.msra.mxu1 %v1476_v8 }
  0x61   :  { %837 = vmatpush.bf16.msra.mxu0 %v1467_v57 }
  0x62   :  { %921 = vmatpush.bf16.msra.mxu1 %v1475_v9 }
  0x65   :  { %838 = vmatpush.bf16.msra.mxu0 %v1466_v2 }
  0x66   :  { %922 = vmatpush.bf16.msra.mxu1 %v1474_v18 }
  0x69   :  { %839 = vmatpush.bf16.msra.mxu0 %v1465_v3 }
  0x6d   :  { %840 = vmatpush.bf16.msra.mxu0 %v1464_v4 }
  0x71   :  { %841 = vmatpush.bf16.msra.mxu0 %v1463_v5 }
  0xb1   :  { %v508_v13 = vpop.f32.mrf.mxu0 }
  0xb2   :  { %v522_v14 = vpop.f32.mrf.mxu1  ;;  %v509_v19 = vadd.f32 %v1501_v17, %v508_v13 }
  0xb4   :  { %v523_v24 = vadd.f32 %v522_v14, %v509_v19  ;;  %v1473_v19 = vld [vmem:[#allocation7 + $0xd0] sm:$0xff] }
  0xb5   :  { %923 = vmatpush.bf16.msra.mxu1 %v1473_v19 }
  0xb9   :  { %v536_v15 = vpop.f32.mrf.mxu2  ;;  %v510_v21 = vpop.f32.mrf.mxu0  ;;  %924 = vmatpush.bf16.msra.mxu1 %v1472_v20 }
  0xba   :  { %v524_v22 = vpop.f32.mrf.mxu1  ;;  %v550_v26 = vpop.f32.mrf.mxu3  ;;  %v511_v27 = vadd.f32 %v1501_v17, %v510_v21  ;;  %v537_v28 = vadd.f32 %v536_v15, %v523_v24  ;;  %v1471_v21 = vld [vmem:[#allocation7 + $0xc0] sm:$0xff]  ;;  %v1484_v24 = vld [vmem:[#allocation7 + $0x128] sm:$0xff] }
  0xbc   :  { %v525_v30 = vadd.f32 %v524_v22, %v511_v27  ;;  %v551_v33 = vadd.f32 %v550_v26, %v537_v28  ;;  %v1486_v22 = vld [vmem:[#allocation7 + $0x138] sm:$0xff]  ;;  %v1504_v27 = vld [vmem:[#allocation8 + $0x3] ss:$0 sm:$0xff] }
  0xbd   :  { %925 = vmatpush.bf16.msra.mxu1 %v1471_v21  ;;  %1002 = vmatpush.bf16.msra.mxu3 %v1486_v22 }
  0xc1   :  { %v538_v23 = vpop.f32.mrf.mxu2 }
  0xc2   :  { %v539_v35 = vadd.f32 %v538_v23, %v525_v30  ;;  %v552_v37 = vpop.f32.mrf.mxu3  ;;  %v1485_v23 = vld [vmem:[#allocation7 + $0x130] sm:$0xff] }
  0xc3   :  { %1003 = vmatpush.bf16.msra.mxu3 %v1485_v23 }
  0xc4   :  { %v553_v38 = vadd.f32 %v552_v37, %v539_v35  ;;  %v1481_v35 = vld [vmem:[#allocation7 + $0x110] sm:$0xff]  ;;  %v1479_v37 = vld [vmem:[#allocation7 + $0x100] sm:$0xff] }
  0xc7   :  { %1004 = vmatpush.bf16.msra.mxu3 %v1484_v24 }
  0xc9   :  { %v592_v34 = vpop.f32.mrf.mxu2 }
  0xcb   :  { %1005 = vmatpush.bf16.msra.mxu3 %v1483_v25 }
  0xd1   :  { %v564_v31 = vpop.f32.mrf.mxu0  ;;  %v594_v45 = vpop.f32.mrf.mxu2 }
  0xd2   :  { %v578_v32 = vpop.f32.mrf.mxu1  ;;  %v565_v36 = vadd.f32 %v564_v31, %v551_v33 }
  0xd4   :  { %v579_v39 = vadd.f32 %v578_v32, %v565_v36  ;;  %v1480_v36 = vld [vmem:[#allocation7 + $0x108] sm:$0xff] }
  0xd6   :  { %v593_v43 = vadd.f32 %v592_v34, %v579_v39  ;;  %v1482_v34 = vld [vmem:[#allocation7 + $0x118] sm:$0xff]  ;;  %v1505_v39 = vld [vmem:[#allocation8 + $0x4] ss:$0 sm:$0xff] }
  0xd7   :  { %1006 = vmatpush.bf16.msra.mxu3 %v1482_v34 }
  0xd8   :  { %v597_v47 = vmax.f32 %v593_v43, 0.0 }
  0xd9   :  { %v566_v40 = vpop.f32.mrf.mxu0 }
  0xda   :  { %v567_v41 = vadd.f32 %v566_v40, %v553_v38  ;;  %v580_v42 = vpop.f32.mrf.mxu1 }
  0xdb   :  { %1007 = vmatpush.bf16.msra.mxu3 %v1481_v35 }
  0xdc   :  { %v581_v44 = vadd.f32 %v580_v42, %v567_v41 }
  0xde   :  { %v595_v46 = vadd.f32 %v594_v45, %v581_v44 }
  0xdf   :  { %1008 = vmatpush.bf16.msra.mxu3 %v1480_v36 }
  0xe0   :  { %v598_v48 = vmax.f32 %v595_v46, 0.0 }
  0xe2   :  { %v599_v49 = vpack.c.bf16 %v598_v48, %v597_v47  ;;  %v1506_v47 = vld [vmem:[#allocation8 + $0x5] ss:$0 sm:$0xff] }
  0xe3   :  { %1009 = vmatpush.bf16.msra.mxu3 %v1479_v37 }
  0xe4   :  { %674 = vmatmul.bf16.vlgmr.msrb.gmra.mxu3 %v599_v49 }
 0x167   :  { %v675_v58 = vpop.f32.mrf.mxu3 }
 0x168   :  { %v676_v60 = vadd.f32 %v1502_v59, %v675_v58 }
 0x16a   :  { %v680_v63 = vmax.f32 %v676_v60, 0.0 }
 0x16f   :  { %v677_v61 = vpop.f32.mrf.mxu3 }
 0x170   :  { %v678_v62 = vadd.f32 %v1502_v59, %v677_v61 }
 0x172   :  { %v681_v0 = vmax.f32 %v678_v62, 0.0 }
 0x174   :  { %v682_v1 = vpack.c.bf16 %v681_v0, %v680_v63 }
 0x176   :  { %758 = vmatmul.bf16.vlgmr.msra.gmra.mxu2 %v682_v1 }
 0x1f9   :  { %v759_v10 = vpop.f32.mrf.mxu2 }
 0x1fa   :  { %v760_v12 = vadd.f32 %v1503_v11, %v759_v10 }
 0x1fc   :  { %v764_v15 = vmax.f32 %v760_v12, 0.0 }
 0x201   :  { %v761_v13 = vpop.f32.mrf.mxu2 }
 0x202   :  { %v762_v14 = vadd.f32 %v1503_v11, %v761_v13 }
 0x204   :  { %v765_v16 = vmax.f32 %v762_v14, 0.0 }
 0x206   :  { %v766_v17 = vpack.c.bf16 %v765_v16, %v764_v15 }
 0x208   :  { %842 = vmatmul.bf16.vlgmr.msra.gmra.mxu0 %v766_v17 }
 0x285   :  { %v843_v26 = vpop.f32.mrf.mxu0 }
 0x286   :  { %v844_v28 = vadd.f32 %v1504_v27, %v843_v26 }
 0x288   :  { %v848_v31 = vmax.f32 %v844_v28, 0.0 }
 0x28d   :  { %v845_v29 = vpop.f32.mrf.mxu0 }
 0x28e   :  { %v846_v30 = vadd.f32 %v1504_v27, %v845_v29 }
 0x290   :  { %v849_v32 = vmax.f32 %v846_v30, 0.0 }
 0x292   :  { %v850_v33 = vpack.c.bf16 %v849_v32, %v848_v31 }
 0x294   :  { %926 = vmatmul.bf16.vlgmr.msra.gmra.mxu1 %v850_v33 }
 0x311   :  { %v927_v38 = vpop.f32.mrf.mxu1 }
 0x312   :  { %v928_v40 = vadd.f32 %v1505_v39, %v927_v38 }
 0x314   :  { %v932_v43 = vmax.f32 %v928_v40, 0.0 }
 0x319   :  { %v929_v41 = vpop.f32.mrf.mxu1 }
 0x31a   :  { %v930_v42 = vadd.f32 %v1505_v39, %v929_v41 }
 0x31c   :  { %v933_v44 = vmax.f32 %v930_v42, 0.0 }
 0x31e   :  { %v934_v45 = vpack.c.bf16 %v933_v44, %v932_v43 }
 0x320   :  { %1010 = vmatmul.bf16.vlgmr.msra.gmra.mxu3 %v934_v45 }
 0x3a3   :  { %v1011_v46 = vpop.f32.mrf.mxu3 }
 0x3a4   :  { %v1012_v49 = vadd.f32 %v1506_v47, %v1011_v46 }
 0x3ab   :  { %v1013_v48 = vpop.f32.mrf.mxu3 }
 0x3ac   :  { %v1014_v50 = vadd.f32 %v1506_v47, %v1013_v48 }
 0x3ae   :  { %v1490_v51 = vpack.c.bf16 %v1014_v50, %v1012_v49 }
 0x3b0   :  { %1491 = vst [vmem:[#allocation10] sm:$0xff] %v1490_v51  }
 0x3b1   :  { %1032 = dma.vmem_to_hbm [thread:$0]  %s1025_s3, 128, %s1027_s13, [#allocation4], %s1636_s23, %s1636_s23, %s1637_s24  }
 0x3b2   :  { %1633 = dma.done.wait [#allocation4], 128  }
 0x3b3   :  { %1634 = vsyncadd [#allocation4], 4294967168 }
 0x3b4   :  { %1037 = vsyncpa [#allocation3], 1 }
 0x3b5   :  { %1038 = vsyncpa [#allocation6], 1 }
 0x3b6   :  { %1039 = vsyncpa [#allocation9], 1 }
 0x3b7   :  { %1040 = vsyncpa [#allocation4], 1 }

</bundles_post_ra>
